<compile_context>
chip_gen: v5e
topology: v5e:2x2
jax: 0.10.0
libtpu: 0.0.40
codegen_flags: <defaults>
</compile_context>

<pallas_src>
import functools

import jax
import jax.numpy as jnp
from jax import lax
from jax.experimental import pallas as pl
from jax.experimental.pallas import tpu as pltpu


def _round_up(x, m):
    return (x + m - 1) // m * m


def _default_act_dtype():
    """bf16 tanh/activations on chips with a bf16 VPU/EUP (v6e, v7x, ...);
    f32 on v5e and older (no bf16 VPU/EUP)."""
    try:
        kind = jax.devices()[0].device_kind.lower()
    except Exception:
        return jnp.float32
    if any(v in kind for v in ("v2", "v3", "v4", "v5")):
        return jnp.float32
    return jnp.bfloat16


def mlp_wavefunction_kernel(x_ref, w1_ref, b1_ref, w2_ref, b2_ref,
                            w3_ref, b3_ref, o_ref, *, act_dtype):
    # x_ref : (TILE_B, input_dim) f32   -- batch-major tile, straight from HBM
    # w1_ref: (H1, input_dim) bf16, b1_ref: (H1, 1) f32
    # w2_ref: (H2, H1) bf16,        b2_ref: (H2, 1) f32
    # w3_ref: (H2, 1) f32,          b3_ref: (1, 1) f32
    # o_ref : (1, TILE_B) f32           -- lane-dense output row
    xb = x_ref[...].astype(w1_ref.dtype)          # cheap VPU cast to bf16

    # Layer 1: h1^T = tanh(W1 . x^T + b1) -> (H1, TILE_B).
    # Contract over the last dim of BOTH operands (A.B^T form) so the
    # batch-major x tile never needs an explicit transpose; the result is
    # already feature-major with the batch on the lane axis.
    z1 = lax.dot_general(w1_ref[...], xb, (((1,), (1,)), ((), ())),
                         preferred_element_type=jnp.float32) + b1_ref[...]
    h1 = jnp.tanh(z1.astype(act_dtype))           # bf16 tanh on v6e/v7x

    # Layer 2: h2^T = tanh(W2 . h1^T + b2) -> (H2, TILE_B).
    z2 = jnp.dot(w2_ref[...], h1.astype(w2_ref.dtype),
                 preferred_element_type=jnp.float32) + b2_ref[...]
    h2 = jnp.tanh(z2.astype(act_dtype))

    # Output head (H2 -> 1): VPU multiply + sublane reduce (avoids an MXU pass
    # with a single output column).  f32 promotion via the f32 w3 column.
    out = jnp.sum(h2 * w3_ref[...], axis=0, keepdims=True) + b3_ref[...]
    o_ref[...] = out.astype(o_ref.dtype)


@functools.partial(jax.jit, static_argnames=("tile_b", "operand_dtype",
                                             "act_dtype"))
def neural_net_wavefunction(x, params, *, tile_b=8192,
                            operand_dtype=jnp.bfloat16, act_dtype=None):
    """x: (B, input_dim) f32.  Returns (B,) f32  (== MLP(x).squeeze(-1))."""
    if act_dtype is None:
        act_dtype = _default_act_dtype()

    w1, b1, w2, b2, w3, b3 = params      # PyTorch layout: W (out, in), b (out,)
    B, input_dim = x.shape
    h1_dim = w1.shape[0]
    h2_dim = w2.shape[0]

    # ---- tile / grid selection --------------------------------------------
    b_lanes = _round_up(B, 128)
    tile = min(int(tile_b), b_lanes)
    # Keep grid >= 2 once the batch is splittable so v7x's two TensorCores
    # both get work (harmless extra grid step on single-TC v5e/v6e).
    if b_lanes >= 2 * 128:
        tile = min(tile, _round_up(pl.cdiv(B, 2), 128))
    tile = max(128, _round_up(tile, 128))

    # Cap the tile so the per-tile VMEM footprint stays under ~40 MiB
    # (pessimistic, lane/sublane-padded estimate) -- safe on v7x's 64 MiB VMEM.
    act_bytes = jnp.dtype(act_dtype).itemsize
    per_elem = (2 * max(input_dim, 128) * 4            # double-buffered f32 x tile
                + 2 * 8 * 4                            # double-buffered out row
                + (h1_dim + h2_dim) * (4 + act_bytes)) # f32 pre-acts + activations
    vmem_budget = 40 * 1024 * 1024
    tile_cap = max(128, (vmem_budget // per_elem) // 128 * 128)
    tile = min(tile, tile_cap)

    grid = (pl.cdiv(B, tile),)

    # ---- operands -----------------------------------------------------------
    w1k = w1.astype(operand_dtype)                      # (H1, input_dim)
    w2k = w2.astype(operand_dtype)                      # (H2, H1)
    b1k = b1.reshape(h1_dim, 1).astype(jnp.float32)
    b2k = b2.reshape(h2_dim, 1).astype(jnp.float32)
    w3k = w3.reshape(h2_dim, 1).astype(jnp.float32)     # output head stays f32
    b3k = b3.reshape(1, 1).astype(jnp.float32)

    const = lambda i: (0, 0)                            # weights stay resident
    cost = pl.CostEstimate(
        flops=2 * B * (input_dim * h1_dim + h1_dim * h2_dim + h2_dim),
        transcendentals=B * (h1_dim + h2_dim),
        bytes_accessed=(B * input_dim * 4               # x stream (f32)
                        + B * 4                         # output row
                        + (h1_dim * input_dim + h2_dim * h1_dim) * 2
                        + (h1_dim + 2 * h2_dim + 1) * 4),
    )

    kernel = functools.partial(mlp_wavefunction_kernel, act_dtype=act_dtype)

    out = pl.pallas_call(
        kernel,
        out_shape=jax.ShapeDtypeStruct((1, B), jnp.float32),
        grid=grid,
        in_specs=[
            pl.BlockSpec((tile, input_dim), lambda i: (i, 0)),   # x tile (batch-major)
            pl.BlockSpec((h1_dim, input_dim), const),            # W1
            pl.BlockSpec((h1_dim, 1), const),                    # b1
            pl.BlockSpec((h2_dim, h1_dim), const),                # W2
            pl.BlockSpec((h2_dim, 1), const),                    # b2
            pl.BlockSpec((h2_dim, 1), const),                    # w3 (head)
            pl.BlockSpec((1, 1), const),                         # b3
        ],
        out_specs=pl.BlockSpec((1, tile), lambda i: (0, i)),     # lane-dense row
        compiler_params=pltpu.CompilerParams(
            dimension_semantics=("parallel",),
            vmem_limit_bytes=48 * 1024 * 1024,
        ),
        cost_estimate=cost,
    )(x.astype(jnp.float32), w1k, b1k, w2k, b2k, w3k, b3k)

    return out[0]    # squeeze(-1) of the MLP output, shape (B,)


def init_params(key, input_dim, layers=(64, 64)):
    """PyTorch nn.Linear-style init: W (out, in), b (out,), U(-1/sqrt(in), 1/sqrt(in))."""
    dims = [input_dim] + list(layers) + [1]
    params = []
    for i in range(len(dims) - 1):
        fan_in, fan_out = dims[i], dims[i + 1]
        key, kw, kb = jax.random.split(key, 3)
        bound = float(fan_in) ** -0.5
        w = jax.random.uniform(kw, (fan_out, fan_in), jnp.float32,
                               minval=-bound, maxval=bound)
        b = jax.random.uniform(kb, (fan_out,), jnp.float32,
                               minval=-bound, maxval=bound)
        params.extend([w, b])
    return tuple(params)


def reference_forward_f32(x, params):
    """Pure-f32 JAX reference of the PyTorch forward pass."""
    w1, b1, w2, b2, w3, b3 = params
    h = jnp.tanh(x @ w1.T + b1)
    h = jnp.tanh(h @ w2.T + b2)
    return (h @ w3.T + b3)[:, 0]


def reference_forward_mixed(x, params, operand_dtype=jnp.bfloat16,
                            act_dtype=jnp.bfloat16):
    """Mathematical spec of the kernel's mixed-precision arithmetic."""
    w1, b1, w2, b2, w3, b3 = params
    xo = x.astype(operand_dtype)
    z1 = jnp.dot(xo, w1.astype(operand_dtype).T,
                 preferred_element_type=jnp.float32) + b1
    h1 = jnp.tanh(z1.astype(act_dtype))
    z2 = jnp.dot(h1.astype(operand_dtype), w2.astype(operand_dtype).T,
                 preferred_element_type=jnp.float32) + b2
    h2 = jnp.tanh(z2.astype(act_dtype))
    return jnp.sum(h2.astype(jnp.float32) * w3[0], axis=-1) + b3[0]


if __name__ == "__main__":
    key = jax.random.PRNGKey(0)
    batch, input_dim = 8, 16

    key, kx = jax.random.split(key)
    x = jax.random.normal(kx, (batch, input_dim), jnp.float32)

    params = init_params(key, input_dim, layers=(64, 64))

    act_dtype = _default_act_dtype()
    out = neural_net_wavefunction(x, params, act_dtype=act_dtype)
    out = jax.block_until_ready(out)
    assert out.shape == (batch,)

    # Check against the mixed-precision spec that mirrors the kernel math.
    ref_mixed = reference_forward_mixed(x, params, act_dtype=act_dtype)
    tol = 1e-3 if act_dtype == jnp.float32 else 5e-2
    assert jnp.allclose(out, ref_mixed, atol=tol, rtol=tol), (
        f"kernel vs mixed-precision ref: max err "
        f"{jnp.max(jnp.abs(out - ref_mixed))}"
    )
    # Loose sanity check against the full-f32 PyTorch-equivalent forward.
    ref_f32 = reference_forward_f32(x, params)
    assert jnp.allclose(out, ref_f32, atol=2.5e-1, rtol=1e-1), (
        f"kernel vs f32 ref: max err {jnp.max(jnp.abs(out - ref_f32))}"
    )

    print("KERNEL_OK")
</pallas_src>

<mosaic_0001>
module attributes {stable_mosaic.version = 11 : i64} {
  func.func @mlp_wavefunction_kernel(%arg0: i32, %arg1: memref<128x16xf32, #tpu.memory_space<vmem>>, %arg2: memref<64x16xbf16, #tpu.memory_space<vmem>>, %arg3: memref<64x1xf32, #tpu.memory_space<vmem>>, %arg4: memref<64x64xbf16, #tpu.memory_space<vmem>>, %arg5: memref<64x1xf32, #tpu.memory_space<vmem>>, %arg6: memref<64x1xf32, #tpu.memory_space<vmem>>, %arg7: memref<1x1xf32, #tpu.memory_space<vmem>>, %arg8: memref<1x128xf32, #tpu.memory_space<vmem>>) attributes {dimension_semantics = [#tpu.dimension_semantics<parallel>], iteration_bounds = array<i64: 1>, scalar_prefetch = 0 : i64, scratch_operands = 0 : i64, tpu.core_type = #tpu.core_type<tc>, window_params = [{transform_indices = @transform_0, window_bounds = array<i64: 128, 16>}, {pipeline_mode = #tpu.pipeline_mode<synchronous>, transform_indices = @transform_1, window_bounds = array<i64: 64, 16>}, {pipeline_mode = #tpu.pipeline_mode<synchronous>, transform_indices = @transform_2, window_bounds = array<i64: 64, 1>}, {pipeline_mode = #tpu.pipeline_mode<synchronous>, transform_indices = @transform_3, window_bounds = array<i64: 64, 64>}, {pipeline_mode = #tpu.pipeline_mode<synchronous>, transform_indices = @transform_4, window_bounds = array<i64: 64, 1>}, {pipeline_mode = #tpu.pipeline_mode<synchronous>, transform_indices = @transform_5, window_bounds = array<i64: 64, 1>}, {pipeline_mode = #tpu.pipeline_mode<synchronous>, transform_indices = @transform_6, window_bounds = array<i64: 1, 1>}, {transform_indices = @transform_7, window_bounds = array<i64: 1, 128>}]} {
    %c0 = arith.constant 0 : index
    %c0_0 = arith.constant 0 : index
    %0 = vector.load %arg1[%c0, %c0_0] : memref<128x16xf32, #tpu.memory_space<vmem>>, vector<128x16xf32>
    %1 = arith.truncf %0 : vector<128x16xf32> to vector<128x16xbf16>
    %c0_1 = arith.constant 0 : index
    %c0_2 = arith.constant 0 : index
    %2 = vector.load %arg2[%c0_1, %c0_2] : memref<64x16xbf16, #tpu.memory_space<vmem>>, vector<64x16xbf16>
    %cst = arith.constant dense<0.000000e+00> : vector<64x128xf32>
    %3 = tpu.matmul %2, %1, %cst {dimension_numbers = #tpu.dot_dimension_numbers<[1], [1], [0], [0], [0, 0, 1, 0], [], []>} : vector<64x16xbf16>, vector<128x16xbf16>, vector<64x128xf32> -> vector<64x128xf32>
    %c0_3 = arith.constant 0 : index
    %c0_4 = arith.constant 0 : index
    %4 = vector.load %arg3[%c0_3, %c0_4] : memref<64x1xf32, #tpu.memory_space<vmem>>, vector<64x1xf32>
    %5 = vector.broadcast %4 : vector<64x1xf32> to vector<64x128xf32>
    %6 = arith.addf %3, %5 : vector<64x128xf32>
    %7 = arith.truncf %6 : vector<64x128xf32> to vector<64x128xbf16>
    %8 = math.tanh %7 : vector<64x128xbf16>
    %c0_5 = arith.constant 0 : index
    %c0_6 = arith.constant 0 : index
    %9 = vector.load %arg4[%c0_5, %c0_6] : memref<64x64xbf16, #tpu.memory_space<vmem>>, vector<64x64xbf16>
    %cst_7 = arith.constant dense<0.000000e+00> : vector<64x128xf32>
    %10 = tpu.matmul %9, %8, %cst_7 {dimension_numbers = #tpu.dot_dimension_numbers<[1], [0], [0], [1], [0, 0, 1, 1], [], []>} : vector<64x64xbf16>, vector<64x128xbf16>, vector<64x128xf32> -> vector<64x128xf32>
    %c0_8 = arith.constant 0 : index
    %c0_9 = arith.constant 0 : index
    %11 = vector.load %arg5[%c0_8, %c0_9] : memref<64x1xf32, #tpu.memory_space<vmem>>, vector<64x1xf32>
    %12 = vector.broadcast %11 : vector<64x1xf32> to vector<64x128xf32>
    %13 = arith.addf %10, %12 : vector<64x128xf32>
    %14 = arith.truncf %13 : vector<64x128xf32> to vector<64x128xbf16>
    %15 = math.tanh %14 : vector<64x128xbf16>
    %c0_10 = arith.constant 0 : index
    %c0_11 = arith.constant 0 : index
    %16 = vector.load %arg6[%c0_10, %c0_11] : memref<64x1xf32, #tpu.memory_space<vmem>>, vector<64x1xf32>
    %17 = arith.extf %15 : vector<64x128xbf16> to vector<64x128xf32>
    %18 = vector.broadcast %16 : vector<64x1xf32> to vector<64x128xf32>
    %19 = arith.mulf %17, %18 : vector<64x128xf32>
    %cst_12 = arith.constant dense<0.000000e+00> : vector<128xf32>
    %20 = vector.multi_reduction <add>, %19, %cst_12 [0] : vector<64x128xf32> to vector<128xf32>
    %21 = vector.shape_cast %20 : vector<128xf32> to vector<1x128xf32>
    %c0_13 = arith.constant 0 : index
    %c0_14 = arith.constant 0 : index
    %22 = vector.load %arg7[%c0_13, %c0_14] : memref<1x1xf32, #tpu.memory_space<vmem>>, vector<1x1xf32>
    %23 = vector.broadcast %22 : vector<1x1xf32> to vector<1x128xf32>
    %24 = arith.addf %21, %23 : vector<1x128xf32>
    %c0_15 = arith.constant 0 : index
    %c0_16 = arith.constant 0 : index
    %25 = vector.load %arg8[%c0_15, %c0_16] : memref<1x128xf32, #tpu.memory_space<vmem>>, vector<1x128xf32>
    tpu.vector_store %arg8[%c0_15, %c0_16], %24 {strides = array<i32>} : memref<1x128xf32, #tpu.memory_space<vmem>>, vector<1x128xf32>,
    return
  }
  func.func @transform_0(%arg0: i32) -> (i32, i32) {
    %c0_i32 = arith.constant 0 : i32
    %c0_i32_0 = arith.constant 0 : i32
    return %arg0, %c0_i32 : i32, i32
  }
  func.func @transform_1(%arg0: i32) -> (i32, i32) {
    %c0_i32 = arith.constant 0 : i32
    %c0_i32_0 = arith.constant 0 : i32
    %c0_i32_1 = arith.constant 0 : i32
    return %c0_i32, %c0_i32_0 : i32, i32
  }
  func.func @transform_2(%arg0: i32) -> (i32, i32) {
    %c0_i32 = arith.constant 0 : i32
    %c0_i32_0 = arith.constant 0 : i32
    %c0_i32_1 = arith.constant 0 : i32
    return %c0_i32, %c0_i32_0 : i32, i32
  }
  func.func @transform_3(%arg0: i32) -> (i32, i32) {
    %c0_i32 = arith.constant 0 : i32
    %c0_i32_0 = arith.constant 0 : i32
    %c0_i32_1 = arith.constant 0 : i32
    return %c0_i32, %c0_i32_0 : i32, i32
  }
  func.func @transform_4(%arg0: i32) -> (i32, i32) {
    %c0_i32 = arith.constant 0 : i32
    %c0_i32_0 = arith.constant 0 : i32
    %c0_i32_1 = arith.constant 0 : i32
    return %c0_i32, %c0_i32_0 : i32, i32
  }
  func.func @transform_5(%arg0: i32) -> (i32, i32) {
    %c0_i32 = arith.constant 0 : i32
    %c0_i32_0 = arith.constant 0 : i32
    %c0_i32_1 = arith.constant 0 : i32
    return %c0_i32, %c0_i32_0 : i32, i32
  }
  func.func @transform_6(%arg0: i32) -> (i32, i32) {
    %c0_i32 = arith.constant 0 : i32
    %c0_i32_0 = arith.constant 0 : i32
    %c0_i32_1 = arith.constant 0 : i32
    return %c0_i32, %c0_i32_0 : i32, i32
  }
  func.func @transform_7(%arg0: i32) -> (i32, i32) {
    %c0_i32 = arith.constant 0 : i32
    %c0_i32_0 = arith.constant 0 : i32
    return %c0_i32, %arg0 : i32, i32
  }
}

</mosaic_0001>

<bundles_post_ra>
// kernel: neural_net_wavefunction.1
= control target key start
LH: loop header
LB: loop body
LE: loop exit
PB: predicated region body
PF: predicated region fallthrough
CT: control target
= control target key end

     0   :  { %s803_s0 = inlined_call_operand.vmem [shape: f32[8,16], index: 0, kind: input, shape index: {}]   ;;  %s804_s1 = inlined_call_operand.vmem [shape: bf16[64,16], index: 1, kind: input, shape index: {}]   ;;  %s805_s2 = inlined_call_operand.vmem [shape: f32[64,1], index: 2, kind: input, shape index: {}]   ;;  %s806_s3 = inlined_call_operand.vmem [shape: bf16[64,64], index: 3, kind: input, shape index: {}]   ;;  %s807_s4 = inlined_call_operand.vmem [shape: f32[64,1], index: 4, kind: input, shape index: {}]   ;;  %s808_s5 = inlined_call_operand.vmem [shape: f32[64,1], index: 5, kind: input, shape index: {}]   ;;  %s809_s6 = inlined_call_operand.<no memory space> [shape: f32[1,1], index: 6, kind: input, shape index: {}]   ;;  %s810_s7 = inlined_call_operand.hbm [shape: f32[1,8], index: 7, kind: output, shape index: {}]  }
   0x1   :  { %v12_v0 = vstv %s809_s6 }
   0x2   :  { %13 = vst [vmem:[#allocation2] sm:$0x1] %v12_v0 }
   0x3   :  { %v44_v1 = vld [vmem:[%s803_s0 + $0x70] sm:$0xff]  ;;  %v45_v2 = vld [vmem:[%s803_s0 + $0x78] sm:$0xff]  ;;  %vm130_vm0 = vcmask 130048   ;;  %v599_v4 = vmov 0   ;;  %v42_v5 = vld [vmem:[%s803_s0 + $0x60] sm:$0xff] }
   0x4   :  { %v53_v3 = vpack.c.bf16 %v45_v2, %v44_v1  ;;  %538 = vset.pattern.permute.xlu0 %v599_v4  ;;  %539 = vset.pattern.permute.xlu1 %v599_v4  ;;  %v43_v6 = vld [vmem:[%s803_s0 + $0x68] sm:$0xff]  ;;  %v68_v7 = vld [vmem:[%s805_s2 + $0x30] sm:$0xff] }
   0x5   :  { %540 = vset.pattern.permute.xlu2 %v599_v4  ;;  %102 = vperm.xlu0 %538, %v68_v7  }
   0x6   :  { %v165_v8 = vsel %vm130_vm0, %v53_v3, 0 }
   0x7   :  { %14 = vsyncpa [#allocation4], 0  ;;  %521 = vmatpush.bf16.xpose.msra.mxu3 %v165_v8  ;;  %167 = vmatpush.bf16.xpose.msra.mxu0 %v165_v8  ;;  %v52_v9 = vpack.c.bf16 %v43_v6, %v42_v5  ;;  %v69_v10 = vld [vmem:[%s805_s2 + $0x38] sm:$0xff]  ;;  %v40_v12 = vld [vmem:[%s803_s0 + $0x50] sm:$0xff]  ;;  %vm296_vm1 = vcmask 523264   ;;  %s463_s22 = sshll.u32 %s810_s7, 4  ;;  %s464_s22 = int_to_ptr.hbm [resolvable:$true] %s463_s22 }
   0x8   :  { %520 = vmatpush.bf16.xpose.msra.mxu2 %v165_v8  ;;  %v41_v13 = vld [vmem:[%s803_s0 + $0x58] sm:$0xff]  ;;  %v66_v14 = vld [vmem:[%s805_s2 + $0x20] sm:$0xff]  ;;  %v39_v19 = vld [vmem:[%s803_s0 + $0x48] sm:$0xff] }
   0x9   :  { %v162_v11 = vsel %vm130_vm0, %v52_v9, 0  ;;  %v51_v15 = vpack.c.bf16 %v41_v13, %v40_v12  ;;  %92 = vperm.xlu1 %539, %v66_v14   ;;  %v62_v16 = vld [vmem:[%s805_s2] sm:$0xff]  ;;  %v67_v20 = vld [vmem:[%s805_s2 + $0x28] sm:$0xff]  ;;  %v36_v24 = vld [vmem:[%s803_s0 + $0x30] sm:$0xff] }
   0xa   :  { %v38_v18 = vld [vmem:[%s803_s0 + $0x40] sm:$0xff]  ;;  %v229_v22 = vld [vmem:[%s807_s4 + $0x8] sm:$0xff]  ;;  %v37_v25 = vld [vmem:[%s803_s0 + $0x38] sm:$0xff] }
   0xb   :  { %v159_v17 = vsel %vm130_vm0, %v51_v15, 0  ;;  %v50_v21 = vpack.c.bf16 %v39_v19, %v38_v18  ;;  %v63_v26 = vld [vmem:[%s805_s2 + $0x8] sm:$0xff]  ;;  %v49_v27 = vpack.c.bf16 %v37_v25, %v36_v24  ;;  %v34_v29 = vld [vmem:[%s803_s0 + $0x20] sm:$0xff]  ;;  %v230_v32 = vld [vmem:[%s807_s4 + $0x10] sm:$0xff] }
   0xc   :  { %v35_v30 = vld [vmem:[%s803_s0 + $0x28] sm:$0xff]  ;;  %v232_v31 = vld [vmem:[%s807_s4 + $0x20] sm:$0xff]  ;;  %v64_v33 = vld [vmem:[%s805_s2 + $0x10] sm:$0xff] }
   0xd   :  { %107 = vperm.xlu0 %538, %v69_v10   ;;  %v156_v23 = vsel %vm130_vm0, %v50_v21, 0  ;;  %v153_v28 = vsel %vm130_vm0, %v49_v27, 0  ;;  %v48_v34 = vpack.c.bf16 %v35_v30, %v34_v29  ;;  %82 = vperm.xlu2 %540, %v64_v33   ;;  %v32_v36 = vld [vmem:[%s803_s0 + $0x10] sm:$0xff]  ;;  %v33_v37 = vld [vmem:[%s803_s0 + $0x18] sm:$0xff]  ;;  %v233_v39 = vld [vmem:[%s807_s4 + $0x28] sm:$0xff] }
   0xe   :  { %v235_v38 = vld [vmem:[%s807_s4 + $0x38] sm:$0xff]  ;;  %v47_v40 = vpack.c.bf16 %v33_v37, %v32_v36  ;;  %v30_v42 = vld [vmem:[%s803_s0] sm:$0xff]  ;;  %v31_v43 = vld [vmem:[%s803_s0 + $0x8] sm:$0xff] }
   0xf   :  { %523 = vmatpush.bf16.xpose.msra.mxu3 %v162_v11  ;;  %168 = vmatpush.bf16.xpose.msra.mxu0 %v162_v11  ;;  %v150_v35 = vsel %vm130_vm0, %v48_v34, 0  ;;  %v65_v44 = vld [vmem:[%s805_s2 + $0x18] sm:$0xff]  ;;  %v372_v45 = vld [vmem:[%s808_s5 + $0x10] sm:$0xff]  ;;  %v370_v46 = vld [vmem:[%s808_s5] sm:$0xff]  ;;  %v46_v47 = vpack.c.bf16 %v31_v43, %v30_v42 }
  0x10   :  { %522 = vmatpush.bf16.xpose.msra.mxu2 %v162_v11  ;;  %v147_v41 = vsel %vm130_vm0, %v47_v40, 0  ;;  %v228_v49 = vld [vmem:[%s807_s4] sm:$0xff]  ;;  %v375_v50 = vld [vmem:[%s808_s5 + $0x28] sm:$0xff]  ;;  %v373_v51 = vld [vmem:[%s808_s5 + $0x18] sm:$0xff] }
  0x11   :  { %97 = vperm.xlu1 %539, %v67_v20   ;;  %v144_v48 = vsel %vm130_vm0, %v46_v47, 0  ;;  %v514_v52 = vld [vmem:[%s804_s1 + $0x10] sm:$0xff]  ;;  %v512_v53 = vld [vmem:[%s804_s1] sm:$0xff]  ;;  %v513_v54 = vld [vmem:[%s804_s1 + $0x8] sm:$0xff] }
  0x12   :  { %v231_v55 = vld [vmem:[%s807_s4 + $0x18] sm:$0xff]  ;;  %v447_v56 = vld [vmem:[#allocation2] sm:$0x1]  ;;  %v376_v57 = vld [vmem:[%s808_s5 + $0x30] sm:$0xff] }
  0x13   :  { %v234_v58 = vld [vmem:[%s807_s4 + $0x30] sm:$0xff]  ;;  %v515_v59 = vld [vmem:[%s804_s1 + $0x18] sm:$0xff]  ;;  %v371_v60 = vld [vmem:[%s808_s5 + $0x8] sm:$0xff] }
  0x14   :  { %v374_v61 = vld [vmem:[%s808_s5 + $0x20] sm:$0xff]  ;;  %v377_v62 = vld [vmem:[%s808_s5 + $0x38] sm:$0xff] }
  0x15   :  { %72 = vperm.xlu0 %538, %v62_v16   ;;  %87 = vperm.xlu2 %540, %v65_v44   ;;  %v516_v47 = vld [vmem:[%s806_s3] sm:$0xff] }
  0x17   :  { %525 = vmatpush.bf16.xpose.msra.mxu3 %v159_v17  ;;  %169 = vmatpush.bf16.xpose.msra.mxu0 %v159_v17 }
  0x18   :  { %524 = vmatpush.bf16.xpose.msra.mxu2 %v159_v17 }
  0x19   :  { %77 = vperm.xlu1 %539, %v63_v26  }
  0x1d   :  { %243 = vperm.xlu0 %538, %v229_v22   ;;  %238 = vperm.xlu2 %540, %v228_v49   ;;  %v518_v49 = vld [vmem:[%s806_s3 + $0x10] sm:$0xff] }
  0x1f   :  { %527 = vmatpush.bf16.xpose.msra.mxu3 %v156_v23  ;;  %170 = vmatpush.bf16.xpose.msra.mxu0 %v156_v23 }
  0x20   :  { %526 = vmatpush.bf16.xpose.msra.mxu2 %v156_v23 }
  0x21   :  { %248 = vperm.xlu1 %539, %v230_v32  }
  0x25   :  { %258 = vperm.xlu0 %538, %v232_v31   ;;  %253 = vperm.xlu2 %540, %v231_v55  }
  0x27   :  { %529 = vmatpush.bf16.xpose.msra.mxu3 %v153_v28  ;;  %171 = vmatpush.bf16.xpose.msra.mxu0 %v153_v28 }
  0x28   :  { %528 = vmatpush.bf16.xpose.msra.mxu2 %v153_v28 }
  0x29   :  { %263 = vperm.xlu1 %539, %v233_v39  }
  0x2d   :  { %273 = vperm.xlu0 %538, %v235_v38   ;;  %268 = vperm.xlu2 %540, %v234_v58  }
  0x2f   :  { %531 = vmatpush.bf16.xpose.msra.mxu3 %v150_v35  ;;  %172 = vmatpush.bf16.xpose.msra.mxu0 %v150_v35 }
  0x30   :  { %530 = vmatpush.bf16.xpose.msra.mxu2 %v150_v35 }
  0x31   :  { %388 = vperm.xlu1 %539, %v370_v46  }
  0x35   :  { %398 = vperm.xlu0 %538, %v372_v45   ;;  %393 = vperm.xlu2 %540, %v371_v60  }
  0x37   :  { %533 = vmatpush.bf16.xpose.msra.mxu3 %v147_v41  ;;  %173 = vmatpush.bf16.xpose.msra.mxu0 %v147_v41 }
  0x38   :  { %532 = vmatpush.bf16.xpose.msra.mxu2 %v147_v41 }
  0x39   :  { %403 = vperm.xlu1 %539, %v373_v51  }
  0x3d   :  { %413 = vperm.xlu0 %538, %v375_v50   ;;  %408 = vperm.xlu2 %540, %v374_v61   ;;  %v519_v50 = vld [vmem:[%s806_s3 + $0x18] sm:$0xff] }
  0x3f   :  { %535 = vmatpush.bf16.xpose.msra.mxu3 %v144_v48  ;;  %174 = vmatpush.bf16.xpose.msra.mxu0 %v144_v48 }
  0x40   :  { %534 = vmatpush.bf16.xpose.msra.mxu2 %v144_v48  ;;  %v517_v48 = vld [vmem:[%s806_s3 + $0x8] sm:$0xff]  ;;  %s600_s3 = smov [#allocation3]  }
  0x41   :  { %418 = vperm.xlu1 %539, %v376_v57   ;;  %s461_s19 = sshll.u32 %s600_s3, 4  ;;  %s462_s19 = int_to_ptr.vmem [resolvable:$true] %s461_s19 }
  0x45   :  { %450 = vperm.xlu0 %538, %v447_v56   ;;  %423 = vperm.xlu2 %540, %v377_v62  }
  0x46   :  { %490 = vmatmul.msk.bf16.vlgmr.msra.gmra.mxu3 %vm130_vm0, %v514_v52  ;;  %488 = vmatmul.msk.bf16.vlgmr.msra.gmra.mxu0 %vm130_vm0, %v512_v53 }
  0x47   :  { %489 = vmatmul.msk.bf16.vlgmr.msra.gmra.mxu2 %vm130_vm0, %v513_v54 }
  0x56   :  { %491 = vmatmul.msk.bf16.gmra.mxu3 %vm130_vm0, %v515_v59 }
  0x67   :  { %v83_v4 = vpop.permute.xlu2 %82 }
  0x6f   :  { %v88_v12 = vpop.permute.xlu2 %87 }
  0x77   :  { %v103_v0 = vpop.permute.xlu0 %102  ;;  %v239_v54 = vpop.permute.xlu2 %238 }
  0x7b   :  { %v93_v1 = vpop.permute.xlu1 %92 }
  0x7f   :  { %v108_v7 = vpop.permute.xlu0 %107  ;;  %v254_v61 = vpop.permute.xlu2 %253 }
  0x83   :  { %v98_v8 = vpop.permute.xlu1 %97 }
  0x87   :  { %v73_v20 = vpop.permute.xlu0 %72 }
  0x8b   :  { %v78_v21 = vpop.permute.xlu1 %77 }
  0x8f   :  { %v244_v56 = vpop.permute.xlu0 %243 }
  0x93   :  { %v249_v57 = vpop.permute.xlu1 %248 }
  0xc3   :  { %v176_v5 = vpop.f32.mrf.mxu0 }
  0xc4   :  { %v177_v23 = vadd.f32 %v176_v5, %v73_v20  ;;  %v264_v5 = vpop.permute.xlu1 %263 }
  0xc9   :  { %v186_v63 = vpop.f32.mrf.mxu3 }
  0xca   :  { %v181_v3 = vpop.f32.mrf.mxu2  ;;  %v187_v11 = vadd.f32 %v186_v63, %v93_v1  ;;  %v259_v1 = vpop.permute.xlu0 %258 }
  0xcb   :  { %v182_v13 = vadd.f32 %v181_v3, %v83_v4  ;;  %v178_v16 = vpop.f32.mrf.mxu0 }
  0xcc   :  { %v179_v24 = vadd.f32 %v178_v16, %v78_v21  ;;  %v389_v21 = vpop.permute.xlu1 %388 }
  0xce   :  { %v196_v30 = vpack.c.bf16 %v179_v24, %v177_v23 }
  0xd0   :  { %v200_v34 = vunpack.c.l.bf16 %v196_v30  ;;  %v201_v36 = vunpack.c.h.bf16 %v196_v30 }
  0xd1   :  { %v188_v2 = vpop.f32.mrf.mxu3 }
  0xd2   :  { %v189_v9 = vadd.f32 %v188_v2, %v98_v8  ;;  %v183_v10 = vpop.f32.mrf.mxu2 }
  0xd3   :  { %v184_v18 = vadd.f32 %v183_v10, %v88_v12 }
  0xd4   :  { %v198_v15 = vpack.c.bf16 %v189_v9, %v187_v11 }
  0xd5   :  { %v197_v26 = vpack.c.bf16 %v184_v18, %v182_v13  ;;  %v269_v13 = vpop.permute.xlu2 %268 }
  0xd6   :  { %v204_v25 = vunpack.c.l.bf16 %v198_v15  ;;  %v205_v29 = vunpack.c.h.bf16 %v198_v15 }
  0xd7   :  { %v202_v31 = vunpack.c.l.bf16 %v197_v26  ;;  %v203_v32 = vunpack.c.h.bf16 %v197_v26 }
  0xd9   :  { %v191_v6 = vpop.f32.mrf.mxu3 }
  0xda   :  { %v192_v17 = vadd.f32 %v191_v6, %v103_v0 }
  0xe1   :  { %v193_v14 = vpop.f32.mrf.mxu3 }
  0xe2   :  { %v194_v19 = vadd.f32 %v193_v14, %v108_v7 }
  0xe4   :  { %v199_v22 = vpack.c.bf16 %v194_v19, %v192_v17  ;;  %v274_v17 = vpop.permute.xlu0 %273 }
  0xe6   :  { %v206_v27 = vunpack.c.l.bf16 %v199_v22  ;;  %v207_v28 = vunpack.c.h.bf16 %v199_v22 }
  0xe8   :  { %541 = vtanh.f32 %v206_v27 }
  0xe9   :  { %543 = vtanh.f32 %v207_v28  ;;  %v394_v28 = vpop.permute.xlu2 %393 }
  0xea   :  { %545 = vtanh.f32 %v204_v25 }
  0xeb   :  { %547 = vtanh.f32 %v205_v29 }
  0xec   :  { %549 = vtanh.f32 %v202_v31 }
  0xed   :  { %551 = vtanh.f32 %v203_v32 }
  0xee   :  { %v542_v33 = vpop.eup %541  ;;  %553 = vtanh.f32 %v200_v34 }
  0xef   :  { %v544_v35 = vpop.eup %543  ;;  %555 = vtanh.f32 %v201_v36 }
  0xf0   :  { %v546_v37 = vpop.eup %545  ;;  %v219_v38 = vpack.c.bf16 %v544_v35, %v542_v33 }
  0xf1   :  { %v548_v39 = vpop.eup %547 }
  0xf2   :  { %313 = vmatpush.bf16.msra.mxu1 %v219_v38  ;;  %v550_v40 = vpop.eup %549  ;;  %v218_v41 = vpack.c.bf16 %v548_v39, %v546_v37  ;;  %v399_v37 = vpop.permute.xlu0 %398 }
  0xf3   :  { %v552_v42 = vpop.eup %551 }
  0xf4   :  { %v554_v43 = vpop.eup %553  ;;  %v217_v44 = vpack.c.bf16 %v552_v42, %v550_v40  ;;  %v404_v42 = vpop.permute.xlu1 %403 }
  0xf5   :  { %v556_v45 = vpop.eup %555 }
  0xf6   :  { %314 = vmatpush.bf16.msra.mxu1 %v218_v41  ;;  %v216_v46 = vpack.c.bf16 %v556_v45, %v554_v43 }
  0xfa   :  { %315 = vmatpush.bf16.msra.mxu1 %v217_v44 }
  0xfe   :  { %316 = vmatpush.bf16.msra.mxu1 %v216_v46 }
 0x101   :  { %508 = vmatmul.msk.bf16.vlgmr.msra.gmra.mxu1 %vm296_vm1, %v516_v47 }
 0x111   :  { %509 = vmatmul.msk.bf16.gmra.mxu1 %vm296_vm1, %v517_v48 }
 0x121   :  { %510 = vmatmul.msk.bf16.gmra.mxu1 %vm296_vm1, %v518_v49 }
 0x131   :  { %511 = vmatmul.msk.bf16.gmra.mxu1 %vm296_vm1, %v519_v50 }
 0x17e   :  { %v318_v51 = vpop.f32.mrf.mxu1 }
 0x17f   :  { %v319_v59 = vadd.f32 %v318_v51, %v239_v54 }
 0x181   :  { %v338_v2 = vpack.c.bf16 %v319_v59, %v319_v59 }
 0x183   :  { %v346_v8 = vunpack.c.l.bf16 %v338_v2 }
 0x186   :  { %v320_v52 = vpop.f32.mrf.mxu1 }
 0x187   :  { %v321_v58 = vadd.f32 %v320_v52, %v244_v56 }
 0x189   :  { %v339_v63 = vpack.c.bf16 %v321_v58, %v321_v58 }
 0x18b   :  { %v347_v6 = vunpack.c.l.bf16 %v339_v63 }
 0x18d   :  { %557 = vtanh.f32 %v347_v6 }
 0x18e   :  { %v323_v53 = vpop.f32.mrf.mxu1  ;;  %559 = vtanh.f32 %v346_v8 }
 0x18f   :  { %v324_v62 = vadd.f32 %v323_v53, %v249_v57  ;;  %v409_v53 = vpop.permute.xlu2 %408 }
 0x191   :  { %v340_v3 = vpack.c.bf16 %v324_v62, %v324_v62 }
 0x193   :  { %v348_v10 = vunpack.c.l.bf16 %v340_v3  ;;  %v558_v20 = vpop.eup %557 }
 0x194   :  { %v560_v23 = vpop.eup %559  ;;  %v363_v26 = vpack.c.bf16 %v558_v20, %v558_v20 }
 0x195   :  { %561 = vtanh.f32 %v348_v10  ;;  %v362_v30 = vpack.c.bf16 %v560_v23, %v560_v23 }
 0x196   :  { %v325_v55 = vpop.f32.mrf.mxu1  ;;  %v379_v33 = vunpack.c.l.bf16 %v363_v26 }
 0x197   :  { %v326_v0 = vadd.f32 %v325_v55, %v254_v61  ;;  %v378_v39 = vunpack.c.l.bf16 %v362_v30  ;;  %v424_v6 = vpop.permute.xlu2 %423 }
 0x198   :  { %v427_v44 = vmul.f32 %v394_v28, %v379_v33 }
 0x199   :  { %v341_v7 = vpack.c.bf16 %v326_v0, %v326_v0  ;;  %v426_v49 = vmul.f32 %v389_v21, %v378_v39  ;;  %v419_v0 = vpop.permute.xlu1 %418 }
 0x19b   :  { %v349_v14 = vunpack.c.l.bf16 %v341_v7  ;;  %v562_v24 = vpop.eup %561  ;;  %v434_v54 = vadd.f32 %v427_v44, %v426_v49 }
 0x19c   :  { %v364_v31 = vpack.c.bf16 %v562_v24, %v562_v24 }
 0x19d   :  { %563 = vtanh.f32 %v349_v14 }
 0x19e   :  { %v328_v60 = vpop.f32.mrf.mxu1  ;;  %v380_v40 = vunpack.c.l.bf16 %v364_v31 }
 0x19f   :  { %v329_v4 = vadd.f32 %v328_v60, %v259_v1  ;;  %v414_v60 = vpop.permute.xlu0 %413 }
 0x1a0   :  { %v428_v50 = vmul.f32 %v399_v37, %v380_v40 }
 0x1a1   :  { %v342_v11 = vpack.c.bf16 %v329_v4, %v329_v4 }
 0x1a2   :  { %v435_v57 = vadd.f32 %v434_v54, %v428_v50 }
 0x1a3   :  { %v350_v16 = vunpack.c.l.bf16 %v342_v11  ;;  %v564_v27 = vpop.eup %563 }
 0x1a4   :  { %v365_v34 = vpack.c.bf16 %v564_v27, %v564_v27 }
 0x1a5   :  { %565 = vtanh.f32 %v350_v16 }
 0x1a6   :  { %v330_v9 = vpop.f32.mrf.mxu1  ;;  %v381_v45 = vunpack.c.l.bf16 %v365_v34 }
 0x1a7   :  { %v331_v12 = vadd.f32 %v330_v9, %v264_v5  ;;  %v451_v14 = vpop.permute.xlu0 %450 }
 0x1a8   :  { %v429_v55 = vmul.f32 %v404_v42, %v381_v45  ;;  %v453_v16 = vperm.slane %v451_v14, 0 }
 0x1a9   :  { %v343_v15 = vpack.c.bf16 %v331_v12, %v331_v12 }
 0x1aa   :  { %v436_v61 = vadd.f32 %v435_v57, %v429_v55 }
 0x1ab   :  { %v351_v18 = vunpack.c.l.bf16 %v343_v15  ;;  %v566_v32 = vpop.eup %565 }
 0x1ac   :  { %v366_v41 = vpack.c.bf16 %v566_v32, %v566_v32 }
 0x1ad   :  { %567 = vtanh.f32 %v351_v18 }
 0x1ae   :  { %v333_v19 = vpop.f32.mrf.mxu1  ;;  %v382_v51 = vunpack.c.l.bf16 %v366_v41 }
 0x1af   :  { %v334_v22 = vadd.f32 %v333_v19, %v269_v13 }
 0x1b0   :  { %v430_v58 = vmul.f32 %v409_v53, %v382_v51 }
 0x1b1   :  { %v344_v25 = vpack.c.bf16 %v334_v22, %v334_v22 }
 0x1b2   :  { %v437_v1 = vadd.f32 %v436_v61, %v430_v58 }
 0x1b3   :  { %v352_v29 = vunpack.c.l.bf16 %v344_v25  ;;  %v568_v36 = vpop.eup %567 }
 0x1b4   :  { %v367_v46 = vpack.c.bf16 %v568_v36, %v568_v36 }
 0x1b5   :  { %569 = vtanh.f32 %v352_v29 }
 0x1b6   :  { %v335_v35 = vpop.f32.mrf.mxu1  ;;  %v383_v56 = vunpack.c.l.bf16 %v367_v46 }
 0x1b7   :  { %v336_v38 = vadd.f32 %v335_v35, %v274_v17 }
 0x1b8   :  { %v431_v62 = vmul.f32 %v414_v60, %v383_v56 }
 0x1b9   :  { %v345_v43 = vpack.c.bf16 %v336_v38, %v336_v38 }
 0x1ba   :  { %v438_v4 = vadd.f32 %v437_v1, %v431_v62 }
 0x1bb   :  { %v570_v47 = vpop.eup %569  ;;  %v353_v48 = vunpack.c.l.bf16 %v345_v43 }
 0x1bc   :  { %v368_v52 = vpack.c.bf16 %v570_v47, %v570_v47 }
 0x1bd   :  { %571 = vtanh.f32 %v353_v48 }
 0x1be   :  { %v384_v59 = vunpack.c.l.bf16 %v368_v52 }
 0x1c0   :  { %v432_v2 = vmul.f32 %v419_v0, %v384_v59 }
 0x1c2   :  { %v439_v7 = vadd.f32 %v438_v4, %v432_v2 }
 0x1c3   :  { %v572_v63 = vpop.eup %571 }
 0x1c4   :  { %v369_v3 = vpack.c.bf16 %v572_v63, %v572_v63 }
 0x1c6   :  { %v385_v5 = vunpack.c.l.bf16 %v369_v3 }
 0x1c8   :  { %v433_v8 = vmul.f32 %v424_v6, %v385_v5 }
 0x1ca   :  { %v440_v9 = vadd.f32 %v439_v7, %v433_v8 }
 0x1cc   :  { %v441_v10 = vrot.slane %v440_v9, 4 }
 0x1ce   :  { %v442_v11 = vadd.f32 %v441_v10, %v440_v9 }
 0x1d0   :  { %v443_v12 = vrot.slane %v442_v11, 2 }
 0x1d2   :  { %v444_v13 = vadd.f32 %v443_v12, %v442_v11 }
 0x1d4   :  { %v445_v15 = vrot.slane %v444_v13, 1 }
 0x1d6   :  { %v446_v17 = vadd.f32 %v445_v15, %v444_v13 }
 0x1d8   :  { %v454_v18 = vadd.f32 %v453_v16, %v446_v17 }
 0x1da   :  { %455 = vst [vmem:[#allocation3] sm:$0x1] %v454_v18 }
 0x1db   :  { %466 = dma.vmem_to_hbm [thread:$0]  %s462_s19, 16, %s464_s22, [#allocation4]  }
 0x1dc   :  { %597 = dma.done.wait [#allocation4], 16  }
 0x1dd   :  { %598 = vsyncadd [#allocation4], 4294967280 }
 0x1de   :  { %471 = vsyncpa [#allocation4], 1 }

</bundles_post_ra>
